<compile_context>
chip_gen: v5e
topology: v5e:2x2
jax: 0.10.0
libtpu: 0.0.40
codegen_flags: <defaults>
</compile_context>

<pallas_src>
import jax
import jax.numpy as jnp
from jax.experimental import pallas as pl
from jax.experimental.pallas import tpu as pltpu


# ----------------------------------------------------------------------------
# Fused kernel: all K layers + residual/sigmoid head for one (batch, T-tile).
# ----------------------------------------------------------------------------
def akgcn_fused_kernel(alphas_ref, betas_ref, x_ref, adj_ref, theta_ref,
                       out_ref, hid_ref):
    # alphas_ref/betas_ref: (K,) f32 SMEM scalars, alpha=(2λ-2)/λ, beta=2/λ
    # x_ref:     (1, N, L) f32 VMEM block,  L = T_tile*C lane-packed (t, c)
    # adj_ref:   (1, N, N) f32 VMEM block
    # theta_ref: (K, L, L) matmul-dtype VMEM block-diagonal thetas (resident)
    # out_ref:   (1, N, L) f32 VMEM block
    # hid_ref:   (N, L)    f32 VMEM scratch (activation resident across layers)
    N, L = hid_ref.shape
    K = theta_ref.shape[0]
    mm_dtype = theta_ref.dtype                           # bf16 on v6e/v7x path

    # Hoisted once per grid step (loop-invariant across layers).
    adj = adj_ref[0]                                     # (N, N) f32
    row_sum = jnp.sum(adj, axis=-1, keepdims=True)       # (N, 1)  XLU reduce
    adj_mm = adj.astype(mm_dtype)                        # MXU operand cast only

    # Per-layer normalisers hoisted out of the layer loop; EUP reciprocal.
    invs = [pl.reciprocal(alphas_ref[k] + betas_ref[k] * row_sum, approx=True)
            for k in range(K)]                           # K x (N, 1) f32

    hid_ref[...] = x_ref[0].astype(jnp.float32)          # layer-0 input

    # K is static and small -> static Python unroll (static SMEM/theta index).
    # TODO(synk): for K >= ~8 switch to lax.fori_loop to bound vreg live ranges.
    for k in range(K):
        alpha = alphas_ref[k]                            # SMEM scalar
        beta = betas_ref[k]                              # SMEM scalar
        hid = hid_ref[...]                               # (N, L) f32

        # theta matmul on the packed layout: block-diag theta applies the same
        # (C,C) theta to every timestep packed into the lanes. Lane width = L.
        h = jnp.dot(hid.astype(mm_dtype), theta_ref[k],
                    preferred_element_type=jnp.float32)  # (N, L) f32

        # v_norm @ h without eye / broadcast adjacency / normalised v:
        #   (alpha*h + beta*(adj @ h)) * 1/(alpha + beta*rowsum(adj))
        prop = alpha * h + beta * jnp.dot(adj_mm, h.astype(mm_dtype),
                                          preferred_element_type=jnp.float32)
        hid_ref[...] = jnp.maximum(prop * invs[k], 0.0)  # relu, f32

    # Fused head: relu(x) + sigmoid(hid); single lane-dense HBM write per step.
    out_ref[0] = (jnp.maximum(x_ref[0], 0.0)
                  + jax.nn.sigmoid(hid_ref[...])).astype(out_ref.dtype)


# ----------------------------------------------------------------------------
# T-tile picker: largest tile whose per-step VMEM footprint fits the budget,
# keeping the packed lane width (tT*C) either == full T*C or a multiple of 128
# so BlockSpecs stay (8,128)-legal and stores stay lane-dense.
# ----------------------------------------------------------------------------
def _pick_t_tile(T, N, C, K, theta_itemsize, budget_bytes):
    def need(tT):
        slab = N * tT * C * 4                  # one (N, tT*C) f32 slab
        io = 2 * 2 * slab                      # x + out blocks, double-buffered
        scratch = slab                         # resident hid accumulator
        adj_bytes = 2 * N * N * 4              # adj block, double-buffered
        th = K * (tT * C) ** 2 * theta_itemsize  # resident block-diag thetas
        return io + scratch + adj_bytes + th

    cands = [t for t in range(1, T + 1)
             if T % t == 0 and (t == T or (t * C) % 128 == 0)]
    for t in sorted(cands, reverse=True):
        if need(t) <= budget_bytes:
            return t
    return min(cands)


def akgcn_forward(x, adj, lambdas, thetas, *, matmul_dtype=jnp.bfloat16):
    """x: (B,T,N,C), adj: (B,N,N), lambdas: (K,), thetas: (K,C,C) -> (B,T,N,C)."""
    B, T, N, C = x.shape
    K, c_in, c_out = thetas.shape
    assert c_in == C and c_out == C, "stacked AKGCN layers require in_dim == out_dim"

    x = x.astype(jnp.float32)
    adj = adj.astype(jnp.float32)

    lam = 1.0 + jnp.maximum(lambdas.astype(jnp.float32), 0.0)   # 1 + relu(λ)
    alphas = (2.0 * lam - 2.0) / lam                            # (K,)
    betas = 2.0 / lam                                           # (K,)

    # VMEM budget per chip generation: ~48 MiB on v7x (64 MiB physical),
    # ~96 MiB on v5e/v6e (128 MiB physical).
    try:
        vmem_cap = int(pltpu.get_tpu_info().vmem_capacity_bytes)
    except Exception:
        vmem_cap = 128 * 1024 * 1024
    vmem_limit = min(int(0.75 * vmem_cap), 100 * 1024 * 1024)

    itemsize = jnp.dtype(matmul_dtype).itemsize
    tile_budget = max(8 * 1024 * 1024, vmem_limit - 8 * 1024 * 1024)
    tT = _pick_t_tile(T, N, C, K, itemsize, tile_budget)
    L = tT * C
    n_t = T // tT

    # Lane packing (wrapper-side layout plumbing, no in-kernel relayout):
    #   (B, T, N, C) -> (B, N, T, C) -> (B, N, T*C)
    x_packed = jnp.transpose(x, (0, 2, 1, 3)).reshape(B, N, T * C)

    # Block-diagonal theta (same block for every T-tile), cast to matmul dtype.
    eye_t = jnp.eye(tT, dtype=jnp.float32)
    theta_bd = jnp.einsum("ts,kcd->ktcsd", eye_t, thetas.astype(jnp.float32))
    theta_bd = theta_bd.reshape(K, L, L).astype(matmul_dtype)

    cost = pl.CostEstimate(
        flops=int(2 * B * K * N * T * C * (L + N)),
        transcendentals=int(B * T * N * C + B * n_t * K * N),
        bytes_accessed=int(4 * (2 * B * T * N * C + B * N * N + 2 * K)
                           + itemsize * K * L * L),
    )

    out_packed = pl.pallas_call(
        akgcn_fused_kernel,
        out_shape=jax.ShapeDtypeStruct((B, N, T * C), jnp.float32),
        grid_spec=pltpu.PrefetchScalarGridSpec(
            num_scalar_prefetch=0,
            grid=(B, n_t),
            in_specs=[
                pl.BlockSpec(memory_space=pltpu.MemorySpace.SMEM),   # alphas
                pl.BlockSpec(memory_space=pltpu.MemorySpace.SMEM),   # betas
                pl.BlockSpec((1, N, L), lambda b, t: (b, 0, t)),     # x packed
                pl.BlockSpec((1, N, N), lambda b, t: (b, 0, 0)),     # adj (per-b)
                pl.BlockSpec((K, L, L), lambda b, t: (0, 0, 0)),     # thetas (resident)
            ],
            out_specs=pl.BlockSpec((1, N, L), lambda b, t: (b, 0, t)),
            scratch_shapes=[pltpu.VMEM((N, L), jnp.float32)],
        ),
        compiler_params=pltpu.CompilerParams(
            dimension_semantics=("parallel", "parallel"),
            vmem_limit_bytes=vmem_limit,
        ),
        cost_estimate=cost,
    )(alphas, betas, x_packed, adj, theta_bd)

    # Unpack back to the module's natural (B, T, N, C) layout.
    return jnp.transpose(out_packed.reshape(B, N, T, C), (0, 2, 1, 3))


# ----------------------------------------------------------------------------
# Pure-JAX reference (mirrors the PyTorch forward) for a correctness check.
# ----------------------------------------------------------------------------
def akgcn_reference(x, adj, lambdas, thetas):
    hid = x
    n = adj.shape[-1]
    eye = jnp.eye(n, dtype=jnp.float32)[None]
    for k in range(thetas.shape[0]):
        lam = 1.0 + jnp.maximum(lambdas[k], 0.0)
        h = jnp.einsum("btnc,cd->btnd", hid, thetas[k])
        v = (2.0 * lam - 2.0) / lam * eye + (2.0 / lam) * adj
        v = v / jnp.sum(v, axis=-1, keepdims=True)
        hid = jnp.maximum(jnp.einsum("bnm,btmd->btnd", v, h), 0.0)
    return jnp.maximum(x, 0.0) + jax.nn.sigmoid(hid)


if __name__ == "__main__":
    # Small shapes consistent with AKGCN(K, in_dim, out_dim, num_of_nodes):
    # residual relu(x) + sigmoid(hid) and layer stacking imply in_dim == out_dim.
    B, T, N = 2, 4, 8
    in_dim = out_dim = 32
    K = 2

    key = jax.random.PRNGKey(0)
    kx, kadj, *kthetas = jax.random.split(key, 2 + K)

    x = jax.random.normal(kx, (B, T, N, in_dim), dtype=jnp.float32)
    adj = jax.random.uniform(kadj, (B, N, N), dtype=jnp.float32)

    # Deterministic parameter init: lambda_ = 1.0, theta ~ U[0, 1)  (torch.rand).
    lambdas = jnp.ones((K,), dtype=jnp.float32)
    thetas = jnp.stack([
        jax.random.uniform(kthetas[i], (in_dim, out_dim), dtype=jnp.float32)
        for i in range(K)
    ])

    out = akgcn_forward(x, adj, lambdas, thetas)   # bf16 MXU operands, f32 acc
    out = jax.block_until_ready(out)

    ref = akgcn_reference(x, adj, lambdas, thetas)
    assert out.shape == (B, T, N, out_dim)
    # Tolerance relaxed for bf16 MXU operands + approx EUP reciprocal
    # (use matmul_dtype=jnp.float32 for the bit-close path).
    assert jnp.allclose(out, ref, atol=5e-2, rtol=5e-2), "mismatch vs reference"

    print("KERNEL_OK")
</pallas_src>

<mosaic_0001>
module attributes {stable_mosaic.version = 11 : i64} {
  func.func @akgcn_fused_kernel(%arg0: i32, %arg1: i32, %arg2: memref<2xf32, #tpu.memory_space<smem>>, %arg3: memref<2xf32, #tpu.memory_space<smem>>, %arg4: memref<1x8x128xf32, #tpu.memory_space<vmem>>, %arg5: memref<1x8x8xf32, #tpu.memory_space<vmem>>, %arg6: memref<2x128x128xbf16, #tpu.memory_space<vmem>>, %arg7: memref<1x8x128xf32, #tpu.memory_space<vmem>>, %arg8: memref<8x128xf32, #tpu.memory_space<vmem>>) attributes {dimension_semantics = [#tpu.dimension_semantics<parallel>, #tpu.dimension_semantics<parallel>], iteration_bounds = array<i64: 2, 1>, scalar_prefetch = 0 : i64, scratch_operands = 1 : i64, tpu.core_type = #tpu.core_type<tc>, window_params = [{transform_indices = @transform_0, window_bounds = array<i64: 2>}, {transform_indices = @transform_1, window_bounds = array<i64: 2>}, {transform_indices = @transform_2, window_bounds = array<i64: 1, 8, 128>}, {transform_indices = @transform_3, window_bounds = array<i64: 1, 8, 8>}, {pipeline_mode = #tpu.pipeline_mode<synchronous>, transform_indices = @transform_4, window_bounds = array<i64: 2, 128, 128>}, {transform_indices = @transform_5, window_bounds = array<i64: 1, 8, 128>}]} {
    %c0 = arith.constant 0 : index
    %c0_0 = arith.constant 0 : index
    %c0_1 = arith.constant 0 : index
    %0 = vector.load %arg5[%c0, %c0_0, %c0_1] : memref<1x8x8xf32, #tpu.memory_space<vmem>>, vector<1x8x8xf32>
    %1 = vector.shape_cast %0 : vector<1x8x8xf32> to vector<8x8xf32>
    %cst = arith.constant dense<0.000000e+00> : vector<8xf32>
    %2 = vector.multi_reduction <add>, %1, %cst [1] : vector<8x8xf32> to vector<8xf32>
    %3 = vector.shape_cast %2 : vector<8xf32> to vector<8x1xf32>
    %4 = arith.truncf %1 : vector<8x8xf32> to vector<8x8xbf16>
    %c0_2 = arith.constant 0 : index
    %5 = memref.load %arg2[%c0_2] : memref<2xf32, #tpu.memory_space<smem>>
    %c0_3 = arith.constant 0 : index
    %6 = memref.load %arg3[%c0_3] : memref<2xf32, #tpu.memory_space<smem>>
    %7 = vector.broadcast %6 : f32 to vector<8x1xf32>
    %8 = arith.mulf %7, %3 : vector<8x1xf32>
    %9 = vector.broadcast %5 : f32 to vector<8x1xf32>
    %10 = arith.addf %9, %8 : vector<8x1xf32>
    %11 = tpu.reciprocal %10 {approx = true} : vector<8x1xf32> -> vector<8x1xf32>
    %c1 = arith.constant 1 : index
    %12 = memref.load %arg2[%c1] : memref<2xf32, #tpu.memory_space<smem>>
    %c1_4 = arith.constant 1 : index
    %13 = memref.load %arg3[%c1_4] : memref<2xf32, #tpu.memory_space<smem>>
    %14 = vector.broadcast %13 : f32 to vector<8x1xf32>
    %15 = arith.mulf %14, %3 : vector<8x1xf32>
    %16 = vector.broadcast %12 : f32 to vector<8x1xf32>
    %17 = arith.addf %16, %15 : vector<8x1xf32>
    %18 = tpu.reciprocal %17 {approx = true} : vector<8x1xf32> -> vector<8x1xf32>
    %c0_5 = arith.constant 0 : index
    %c0_6 = arith.constant 0 : index
    %c0_7 = arith.constant 0 : index
    %19 = vector.load %arg4[%c0_5, %c0_6, %c0_7] : memref<1x8x128xf32, #tpu.memory_space<vmem>>, vector<1x8x128xf32>
    %20 = vector.shape_cast %19 : vector<1x8x128xf32> to vector<8x128xf32>
    %c0_8 = arith.constant 0 : index
    %c0_9 = arith.constant 0 : index
    %21 = vector.load %arg8[%c0_8, %c0_9] : memref<8x128xf32, #tpu.memory_space<vmem>>, vector<8x128xf32>
    tpu.vector_store %arg8[%c0_8, %c0_9], %20 {strides = array<i32>} : memref<8x128xf32, #tpu.memory_space<vmem>>, vector<8x128xf32>,
    %c0_10 = arith.constant 0 : index
    %22 = memref.load %arg2[%c0_10] : memref<2xf32, #tpu.memory_space<smem>>
    %c0_11 = arith.constant 0 : index
    %23 = memref.load %arg3[%c0_11] : memref<2xf32, #tpu.memory_space<smem>>
    %c0_12 = arith.constant 0 : index
    %c0_13 = arith.constant 0 : index
    %24 = vector.load %arg8[%c0_12, %c0_13] : memref<8x128xf32, #tpu.memory_space<vmem>>, vector<8x128xf32>
    %25 = arith.truncf %24 : vector<8x128xf32> to vector<8x128xbf16>
    %c0_14 = arith.constant 0 : index
    %c0_15 = arith.constant 0 : index
    %c0_16 = arith.constant 0 : index
    %26 = vector.load %arg6[%c0_14, %c0_15, %c0_16] : memref<2x128x128xbf16, #tpu.memory_space<vmem>>, vector<1x128x128xbf16>
    %27 = vector.shape_cast %26 : vector<1x128x128xbf16> to vector<128x128xbf16>
    %cst_17 = arith.constant dense<0.000000e+00> : vector<8x128xf32>
    %28 = tpu.matmul %25, %27, %cst_17 {dimension_numbers = #tpu.dot_dimension_numbers<[1], [0], [0], [1], [0, 0, 1, 1], [], []>} : vector<8x128xbf16>, vector<128x128xbf16>, vector<8x128xf32> -> vector<8x128xf32>
    %29 = vector.broadcast %22 : f32 to vector<8x128xf32>
    %30 = arith.mulf %29, %28 : vector<8x128xf32>
    %31 = arith.truncf %28 : vector<8x128xf32> to vector<8x128xbf16>
    %cst_18 = arith.constant dense<0.000000e+00> : vector<8x128xf32>
    %32 = tpu.matmul %4, %31, %cst_18 {dimension_numbers = #tpu.dot_dimension_numbers<[1], [0], [0], [1], [0, 0, 1, 1], [], []>} : vector<8x8xbf16>, vector<8x128xbf16>, vector<8x128xf32> -> vector<8x128xf32>
    %33 = vector.broadcast %23 : f32 to vector<8x128xf32>
    %34 = arith.mulf %33, %32 : vector<8x128xf32>
    %35 = arith.addf %30, %34 : vector<8x128xf32>
    %36 = vector.broadcast %11 : vector<8x1xf32> to vector<8x128xf32>
    %37 = arith.mulf %35, %36 : vector<8x128xf32>
    %cst_19 = arith.constant 0.000000e+00 : f32
    %38 = vector.broadcast %cst_19 : f32 to vector<8x128xf32>
    %39 = arith.maximumf %37, %38 : vector<8x128xf32>
    %c0_20 = arith.constant 0 : index
    %c0_21 = arith.constant 0 : index
    %40 = vector.load %arg8[%c0_20, %c0_21] : memref<8x128xf32, #tpu.memory_space<vmem>>, vector<8x128xf32>
    tpu.vector_store %arg8[%c0_20, %c0_21], %39 {strides = array<i32>} : memref<8x128xf32, #tpu.memory_space<vmem>>, vector<8x128xf32>,
    %c1_22 = arith.constant 1 : index
    %41 = memref.load %arg2[%c1_22] : memref<2xf32, #tpu.memory_space<smem>>
    %c1_23 = arith.constant 1 : index
    %42 = memref.load %arg3[%c1_23] : memref<2xf32, #tpu.memory_space<smem>>
    %c0_24 = arith.constant 0 : index
    %c0_25 = arith.constant 0 : index
    %43 = vector.load %arg8[%c0_24, %c0_25] : memref<8x128xf32, #tpu.memory_space<vmem>>, vector<8x128xf32>
    %44 = arith.truncf %43 : vector<8x128xf32> to vector<8x128xbf16>
    %c1_26 = arith.constant 1 : index
    %c0_27 = arith.constant 0 : index
    %c0_28 = arith.constant 0 : index
    %45 = vector.load %arg6[%c1_26, %c0_27, %c0_28] : memref<2x128x128xbf16, #tpu.memory_space<vmem>>, vector<1x128x128xbf16>
    %46 = vector.shape_cast %45 : vector<1x128x128xbf16> to vector<128x128xbf16>
    %cst_29 = arith.constant dense<0.000000e+00> : vector<8x128xf32>
    %47 = tpu.matmul %44, %46, %cst_29 {dimension_numbers = #tpu.dot_dimension_numbers<[1], [0], [0], [1], [0, 0, 1, 1], [], []>} : vector<8x128xbf16>, vector<128x128xbf16>, vector<8x128xf32> -> vector<8x128xf32>
    %48 = vector.broadcast %41 : f32 to vector<8x128xf32>
    %49 = arith.mulf %48, %47 : vector<8x128xf32>
    %50 = arith.truncf %47 : vector<8x128xf32> to vector<8x128xbf16>
    %cst_30 = arith.constant dense<0.000000e+00> : vector<8x128xf32>
    %51 = tpu.matmul %4, %50, %cst_30 {dimension_numbers = #tpu.dot_dimension_numbers<[1], [0], [0], [1], [0, 0, 1, 1], [], []>} : vector<8x8xbf16>, vector<8x128xbf16>, vector<8x128xf32> -> vector<8x128xf32>
    %52 = vector.broadcast %42 : f32 to vector<8x128xf32>
    %53 = arith.mulf %52, %51 : vector<8x128xf32>
    %54 = arith.addf %49, %53 : vector<8x128xf32>
    %55 = vector.broadcast %18 : vector<8x1xf32> to vector<8x128xf32>
    %56 = arith.mulf %54, %55 : vector<8x128xf32>
    %cst_31 = arith.constant 0.000000e+00 : f32
    %57 = vector.broadcast %cst_31 : f32 to vector<8x128xf32>
    %58 = arith.maximumf %56, %57 : vector<8x128xf32>
    %c0_32 = arith.constant 0 : index
    %c0_33 = arith.constant 0 : index
    %59 = vector.load %arg8[%c0_32, %c0_33] : memref<8x128xf32, #tpu.memory_space<vmem>>, vector<8x128xf32>
    tpu.vector_store %arg8[%c0_32, %c0_33], %58 {strides = array<i32>} : memref<8x128xf32, #tpu.memory_space<vmem>>, vector<8x128xf32>,
    %c0_34 = arith.constant 0 : index
    %c0_35 = arith.constant 0 : index
    %c0_36 = arith.constant 0 : index
    %60 = vector.load %arg4[%c0_34, %c0_35, %c0_36] : memref<1x8x128xf32, #tpu.memory_space<vmem>>, vector<1x8x128xf32>
    %61 = vector.shape_cast %60 : vector<1x8x128xf32> to vector<8x128xf32>
    %cst_37 = arith.constant 0.000000e+00 : f32
    %62 = vector.broadcast %cst_37 : f32 to vector<8x128xf32>
    %63 = arith.maximumf %61, %62 : vector<8x128xf32>
    %c0_38 = arith.constant 0 : index
    %c0_39 = arith.constant 0 : index
    %64 = vector.load %arg8[%c0_38, %c0_39] : memref<8x128xf32, #tpu.memory_space<vmem>>, vector<8x128xf32>
    %65 = arith.negf %64 : vector<8x128xf32>
    %66 = math.exp %65 : vector<8x128xf32>
    %cst_40 = arith.constant 1.000000e+00 : f32
    %67 = vector.broadcast %cst_40 : f32 to vector<8x128xf32>
    %68 = arith.addf %67, %66 : vector<8x128xf32>
    %69 = arith.divf %67, %68 : vector<8x128xf32>
    %70 = arith.addf %63, %69 : vector<8x128xf32>
    %c0_41 = arith.constant 0 : index
    %c0_42 = arith.constant 0 : index
    %c0_43 = arith.constant 0 : index
    %71 = vector.load %arg7[%c0_41, %c0_42, %c0_43] : memref<1x8x128xf32, #tpu.memory_space<vmem>>, vector<1x8x128xf32>
    %72 = vector.shape_cast %71 : vector<1x8x128xf32> to vector<8x128xf32>
    %73 = vector.shape_cast %70 : vector<8x128xf32> to vector<1x8x128xf32>
    tpu.vector_store %arg7[%c0_41, %c0_42, %c0_43], %73 {strides = array<i32>} : memref<1x8x128xf32, #tpu.memory_space<vmem>>, vector<1x8x128xf32>,
    return
  }
  func.func @transform_0(%arg0: i32, %arg1: i32) -> i32 {
    %c0_i32 = arith.constant 0 : i32
    %c0_i32_0 = arith.constant 0 : i32
    return %c0_i32 : i32
  }
  func.func @transform_1(%arg0: i32, %arg1: i32) -> i32 {
    %c0_i32 = arith.constant 0 : i32
    %c0_i32_0 = arith.constant 0 : i32
    return %c0_i32 : i32
  }
  func.func @transform_2(%arg0: i32, %arg1: i32) -> (i32, i32, i32) {
    %c0_i32 = arith.constant 0 : i32
    %c0_i32_0 = arith.constant 0 : i32
    return %arg0, %c0_i32, %arg1 : i32, i32, i32
  }
  func.func @transform_3(%arg0: i32, %arg1: i32) -> (i32, i32, i32) {
    %c0_i32 = arith.constant 0 : i32
    %c0_i32_0 = arith.constant 0 : i32
    %c0_i32_1 = arith.constant 0 : i32
    return %arg0, %c0_i32, %c0_i32_0 : i32, i32, i32
  }
  func.func @transform_4(%arg0: i32, %arg1: i32) -> (i32, i32, i32) {
    %c0_i32 = arith.constant 0 : i32
    %c0_i32_0 = arith.constant 0 : i32
    %c0_i32_1 = arith.constant 0 : i32
    %c0_i32_2 = arith.constant 0 : i32
    return %c0_i32, %c0_i32_0, %c0_i32_1 : i32, i32, i32
  }
  func.func @transform_5(%arg0: i32, %arg1: i32) -> (i32, i32, i32) {
    %c0_i32 = arith.constant 0 : i32
    %c0_i32_0 = arith.constant 0 : i32
    return %arg0, %c0_i32, %arg1 : i32, i32, i32
  }
}

</mosaic_0001>

<bundles_post_ra>
// kernel: tpu_custom_call.1
= control target key start
LH: loop header
LB: loop body
LE: loop exit
PB: predicated region body
PF: predicated region fallthrough
CT: control target
= control target key end

     0   :  { %s1409_s0 = inlined_call_operand.hbm [shape: f32[2], index: 0, kind: input, shape index: {}]   ;;  %s1410_s1 = inlined_call_operand.hbm [shape: f32[2], index: 1, kind: input, shape index: {}]   ;;  %s1411_s2 = inlined_call_operand.hbm [shape: f32[2,8,128], index: 2, kind: input, shape index: {}]   ;;  %s1412_s3 = inlined_call_operand.hbm [shape: f32[2,8,8], index: 3, kind: input, shape index: {}]   ;;  %s1413_s4 = inlined_call_operand.hbm [shape: bf16[2,128,128], index: 4, kind: input, shape index: {}]   ;;  %s1414_s5 = inlined_call_operand.hbm [shape: f32[2,8,128], index: 5, kind: output, shape index: {}]  }
   0x1   :  { %1417 = sst [smem:[#allocation23_spill]] %s1409_s0 }
   0x2   :  { %1418 = sst [smem:[#allocation24_spill]] %s1410_s1 }
   0x3   :  { %1419 = sst [smem:[#allocation25_spill]] %s1413_s4 }
   0x4   :  { %10 = vsyncpa [#allocation6], 0 }
   0x5   :  { %11 = vsyncpa [#allocation8], 0 }
   0x6   :  { %12 = vsyncpa [#allocation4], 0 }
   0x7   :  { %14 = vsyncpa [#allocation4 + $0x1], 0 }
   0x8   :  { %15 = vsyncpa [#allocation11], 0 }
   0x9   :  { %17 = vsyncpa [#allocation11 + $0x1], 0 }
   0xa   :  { %18 = vsyncpa [#allocation5], 0 }
   0xb   :  { %20 = vsyncpa [#allocation5 + $0x1], 0  ;;  %s1228_s18 = smov 0   ;;  %s1230_s19 = smov 0  }
   0xc   :  { %s1232_s20 = smov 0   ;;  %s1234_s21 = smov 0  }
   0xd   :  { %s1236_s22 = smov 0   ;;  %s1238_s23 = smov 0  }
   0xe LB: > { %1420 = sst [smem:[#allocation20_spill]] %s1187_s22  ;;  %s1262_s27 = sadd.s32 4294967295, %s1191_s23   ;;  %s1191_s23 = sphi %s1238_s23, %s26_s23   ;;  %s1187_s22 = sphi %s1236_s22, %s1433_s22   ;;  %s1183_s21 = sphi %s1234_s21, %s1432_s21   ;;  %s1179_s20 = sphi %s1232_s20, %s1436_s20   ;;  %s1175_s19 = sphi %s1230_s19, %s1435_s19   ;;  %s1171_s18 = sphi %s1228_s18, %s1434_s18  }
   0xf   : > { %s1421_s4 = sld [smem:[#allocation25_spill]]  ;;  %p758_p0 = scmp.ge.s32.totalorder %s1191_s23, 1 }
  0x10   : > { %p103_p1 = scmp.eq.s32.totalorder %s1262_s27, 0  ;;  %p188_p2 = scmp.lt.s32.totalorder %s1191_s23, 3 }
  0x11   : > { %s1193_s29 = smov [#allocation12]   ;;  %p762_p5 = scmp.ge.s32.totalorder %s1191_s23, 2 }
  0x12   : > { %p1267_p3 = pnand %p758_p0, %p188_p2  ;;  %s221_s30 = sshll.u32 %s1193_s29, 4  ;;  %s222_s30 = int_to_ptr.vmem [resolvable:$true] %s221_s30 }
  0x13   : > { %s1423_s0 = sld [smem:[#allocation23_spill]]  ;;  %s1194_s9 = smov 64  }
  0x14   : > { %p883_p4 = pneg %p1267_p3  ;;  %s1195_s10 = smov 4  }
  0x15   : > { %s219_s26 = sshll.u32 %s1421_s4, 4  ;;  %s1196_s11 = smov [#allocation3]   ;;  %s220_s26 = int_to_ptr.hbm [resolvable:$true] %s219_s26 }
  0x16   : > { %p884_p6 = pnand %p883_p4, %p103_p1  ;;  %s1424_s1 = sld [smem:[#allocation24_spill]] }
  0x17   : > { %s1197_s15 = smov [#allocation7]   ;;  %s757_s16 = sadd.s32 4294967294, %s1191_s23  }
  0x18   : > { %892 = dma.hbm_to_vmem [thread:$0]  (!%p884_p6), %s220_s26, 2048, %s222_s30, [#allocation11], %s1194_s9, %s1194_s9, %s1195_s10  }
  0x19   : > { %s200_s8 = sshll.u32 %s1423_s0, 4  ;;  %s38_s17 = sadd.s32 1, %s1187_s22  ;;  %s201_s8 = int_to_ptr.hbm [resolvable:$true] %s200_s8 }
  0x1a   : > { %886 = dma.hbm_to_smem (!%p884_p6), %s201_s8, 16, %s1196_s11, [#allocation6]  }
  0x1b   : > { %s89_s24 = sadd.s32 1, %s1179_s20  ;;  %p40_p7 = scmp.ge.s32.totalorder %s38_s17, 2 }
  0x1c   : > { %s210_s14 = sshll.u32 %s1424_s1, 4  ;;  %p96_p8 = scmp.ne.s32.totalorder %s1179_s20, %s1175_s19  ;;  %s211_s14 = int_to_ptr.hbm [resolvable:$true] %s210_s14 }
  0x1d   : > { %889 = dma.hbm_to_smem (!%p884_p6), %s211_s14, 16, %s1197_s15, [#allocation8]  }
  0x1e   : > { %p97_p9 = scmp.eq.s32.totalorder %s1191_s23, 0  ;;  %p102_p10 = scmp.ne.s32.totalorder %s1175_s19, %s1171_s18 }
  0x1f   : > { %s1438_s17 = smov (%p40_p7, %s38_s17), 0  ;;  %p175_p13 = scmp.eq.s32.totalorder %s1262_s27, 1 }
  0x20   : > { %1425 = sst [smem:[#allocation21_spill]] %s1438_s17  ;;  %p1292_p11 = por %p97_p9, %p96_p8 }
  0x21   : > { %p1298_p12 = por %p103_p1, %p102_p10  ;;  %s84_s29 = ssub.s32 %s1187_s22, %s1438_s17 }
  0x22   : > { %p87_p0 = scmp.eq.s32.totalorder %s84_s29, 0  ;;  %p181_p2 = scmp.eq.s32.totalorder %s757_s16, 1 }
  0x23   : > { %p1305_p4 = por %p175_p13, %p96_p8  ;;  %p907_p6 = scmp.lt.s32.totalorder %s1191_s23, 2 }
  0x24   : > { %s1311_s6 = scalar_select %p87_p0, %s1179_s20, %s89_s24  }
  0x25   : > { %p1313_p7 = por %p181_p2, %p102_p10  ;;  %s235_s8 = sand.u32 1, %s1179_s20  }
  0x26   : > { %1429 = sst [smem:[#allocation22_spill]] %s1311_s6  ;;  %s763_s9 = sshll.u32 %s235_s8, 3 }
  0x27   : > { %s764_s10 = sshll.u32 %s1187_s22, 3  ;;  %s239_s14 = scalar_lea.vmem [#allocation9], %s763_s9 }
  0x28   : > { %s244_s13 = scalar_lea.hbm %s1411_s2, %s764_s10  ;;  %s248_s15 = sshll.u32 %s239_s14, 4  ;;  %s249_s15 = int_to_ptr.vmem [resolvable:$true] %s248_s15 }
  0x29   : > { %s246_s16 = sshll.u32 %s244_s13, 4  ;;  %p894_p8 = pnand %p907_p6, %p1292_p11  ;;  %s247_s16 = int_to_ptr.hbm [resolvable:$true] %s246_s16 }
  0x2a   : > { %s263_s0 = scalar_lea.hbm %s1412_s3, %s764_s10  ;;  %s255_s1 = sand.u32 1, %s1191_s23  }
  0x2b   : > { %s236_s4 = scalar_lea.sflag [#allocation4], %s235_s8  ;;  %s265_s17 = sshll.u32 %s263_s0, 4  ;;  %s266_s17 = int_to_ptr.hbm [resolvable:$true] %s265_s17 }
  0x2c   : > { %896 = dma.hbm_to_vmem [thread:$0]  (!%p894_p8), %s247_s16, 128, %s249_s15, %s236_s4  }
  0x2d   : > { %s259_s22 = scalar_lea.vmem [#allocation10], %s763_s9  ;;  %s256_s11 = scalar_lea.sflag [#allocation11], %s255_s1 }
  0x2e   : > { %s267_s6 = sshll.u32 %s259_s22, 4  ;;  %276 = sbr.rel (%p1267_p3) target bundleno = 676 (0x2a4), region = 40  ;;  %s268_s6 = int_to_ptr.vmem [resolvable:$true] %s267_s6 }
  0x2f   : > { %899 = dma.hbm_to_vmem [thread:$0]  (!%p894_p8), %s266_s17, 128, %s268_s6, %s256_s11  }
  0x33   : > { %1146 = dma.done.wait (%p103_p1), [#allocation6], 16  }
  0x34   : > { %1148 = vsyncadd (%p103_p1), [#allocation6], 4294967280 }
  0x35   : > { %1150 = dma.done.wait (%p103_p1), [#allocation8], 16  }
  0x36   : > { %1152 = vsyncadd (%p103_p1), [#allocation8], 4294967280  ;;  %s1339_s0 = sand.u32 1, %s1175_s19  }
  0x37   : > { %s1342_s1 = sshll.u32 %s1339_s0, 3  ;;  %s289_s4 = scalar_lea.sflag [#allocation4], %s1339_s0 }
  0x38   : > { %s292_s22 = scalar_lea.vmem [#allocation9], %s1342_s1 }
  0x39   : > { %1154 = dma.done.wait (%p1298_p12), %s289_s4, 128  }
  0x3a   : > { %1156 = vsyncadd (%p1298_p12), %s289_s4, 4294967168  ;;  %s298_s28 = sand.u32 1, %s1262_s27   ;;  %s302_s25 = scalar_lea.vmem [#allocation10], %s1342_s1 }
  0x3b   : > { %s299_s17 = scalar_lea.sflag [#allocation11], %s298_s28 }
  0x3c   : > { %1158 = dma.done.wait (%p1298_p12), %s299_s17, 128  }
  0x3d   : > { %1160 = vsyncadd (%p1298_p12), %s299_s17, 4294967168 }
  0x3e   : > { %1162 = dma.done.wait (%p103_p1), [#allocation11], 2048  }
  0x3f   : > { %1164 = vsyncadd (%p103_p1), [#allocation11], 4294965248 }
  0x40   : > { %313 = sfence }
  0x41   : > { %v856_v0 = vld [vmem:[#allocation12 + $0x38] sm:$0xff]  ;;  %v855_v1 = vld [vmem:[#allocation12 + $0x30] sm:$0xff]  ;;  %v854_v2 = vld [vmem:[#allocation12 + $0x28] sm:$0xff]  ;;  %vm343_vm0 = vcmask 64512   ;;  %vm451_vm1 = vcmask 1043456   ;;  %s349_s27 = sld [smem:[#allocation7]] }
  0x42   : > { %432 = vmatpush.bf16.msra.mxu0 %v856_v0  ;;  %v853_v3 = vld [vmem:[#allocation12 + $0x20] sm:$0xff]  ;;  %v852_v4 = vld [vmem:[#allocation12 + $0x18] sm:$0xff]  ;;  %v851_v5 = vld [vmem:[#allocation12 + $0x10] sm:$0xff]  ;;  %s364_s26 = sld [smem:[#allocation3]]  ;;  %s846_s9 = sshll.u32 %s1183_s21, 3 }
  0x43   : > { %v850_v6 = vld [vmem:[#allocation12 + $0x8] sm:$0xff]  ;;  %v849_v7 = vld [vmem:[#allocation12] sm:$0xff]  ;;  %v342_v10 = vld [vmem:[%s302_s25] sm:$0xff]  ;;  %s775_s6 = sld [smem:[#allocation7 + $0x1]]  ;;  %s617_s13 = scalar_lea.hbm %s1414_s5, %s846_s9 }
  0x44   : > { %v1360_v8 = vld [vmem:[%s292_s22] sm:$0xff]  ;;  %v344_v11 = vsel %vm343_vm0, %v342_v10, 0.0  ;;  %v864_v12 = vld [vmem:[#allocation12 + $0x78] sm:$0xff]  ;;  %v863_v13 = vld [vmem:[#allocation12 + $0x70] sm:$0xff]  ;;  %v347_v19 = vpack.c.bf16 %v342_v10, %v342_v10  ;;  %s774_s8 = sld [smem:[#allocation3 + $0x1]]  ;;  %s340_s14 = scalar_lea.vmem [#allocation13], %s1342_s1 }
  0x45   : > { %v367_v9 = vpack.c.bf16 %v1360_v8, %v1360_v8  ;;  %345 = vadd.xlane.f32.xlu0 %v344_v11  ;;  %543 = vmatpush.bf16.msra.mxu2 %v864_v12  ;;  %v862_v14 = vld [vmem:[#allocation12 + $0x68] sm:$0xff]  ;;  %v861_v15 = vld [vmem:[#allocation12 + $0x60] sm:$0xff]  ;;  %v860_v21 = vld [vmem:[#allocation12 + $0x58] sm:$0xff]  ;;  %v582_v0 = vmax.f32 %v1360_v8, 0.0  ;;  %s619_s15 = sshll.u32 %s340_s14, 4  ;;  %s621_s21 = sshll.u32 %s617_s13, 4  ;;  %s620_s15 = int_to_ptr.vmem [resolvable:$true] %s619_s15  ;;  %s622_s21 = int_to_ptr.hbm [resolvable:$true] %s621_s21 }
  0x46   : > { %433 = vmatpush.bf16.msra.mxu0 %v855_v1  ;;  %v859_v22 = vld [vmem:[#allocation12 + $0x50] sm:$0xff]  ;;  %v858_v23 = vld [vmem:[#allocation12 + $0x48] sm:$0xff]  ;;  %v857_v24 = vld [vmem:[#allocation12 + $0x40] sm:$0xff]  ;;  %s606_s16 = scalar_lea.sflag [#allocation5], %s1339_s0  ;;  %s1107_s24 = sshra.s32 %s622_s21, 4  ;;  %s1108_s24 = int_to_ptr.hbm [resolvable:$true] %s1107_s24 }
  0x47   : > { %v350_v26 = vstv %s349_s27  ;;  %s1109_s29 = scalar_lea.hbm %s1108_s24, 8  ;;  %s1113_s1 = scalar_lea.hbm %s1414_s5, 16 }
  0x48   : > { %v445_v28 = vstv %s364_s26  ;;  %p1110_p1 = scmp.ne.s32.totalorder %s1108_s24, %s1109_s29  ;;  %p1114_p10 = scmp.lt.s32.totalorder %s1108_s24, %s1414_s5 }
  0x49   : > { %544 = vmatpush.bf16.msra.mxu2 %v863_v13  ;;  %v357_v43 = vstv %s775_s6  ;;  %p1115_p11 = scmp.lt.s32.totalorder %s1113_s1, %s1109_s29 }
  0x4a   : > { %434 = vmatpush.bf16.msra.mxu0 %v854_v2  ;;  %v359_v45 = vstv %s774_s8  ;;  %p1111_p3 = pnand %p1110_p1, %p1305_p4 }
  0x4b   : > { %p1116_p12 = por %p1115_p11, %p1114_p10 }
  0x4c   : > { %p1112_p9 = pneg %p1111_p3 }
  0x4d   : > { %545 = vmatpush.bf16.msra.mxu2 %v862_v14 }
  0x4e   : > { %435 = vmatpush.bf16.msra.mxu0 %v853_v3  ;;  %p1117_p13 = pnand %p1116_p12, %p1112_p9 }
  0x51   : > { %546 = vmatpush.bf16.msra.mxu2 %v861_v15 }
  0x52   : > { %436 = vmatpush.bf16.msra.mxu0 %v852_v4 }
  0x55   : > { %547 = vmatpush.bf16.msra.mxu2 %v860_v21 }
  0x56   : > { %437 = vmatpush.bf16.msra.mxu0 %v851_v5 }
  0x59   : > { %548 = vmatpush.bf16.msra.mxu2 %v859_v22 }
  0x5a   : > { %438 = vmatpush.bf16.msra.mxu0 %v850_v6 }
  0x5d   : > { %549 = vmatpush.bf16.msra.mxu2 %v858_v23 }
  0x5e   : > { %439 = vmatpush.bf16.msra.mxu0 %v849_v7 }
  0x61   : > { %440 = vmatmul.bf16.vlgmr.msra.gmra.mxu0 %v367_v9  ;;  %550 = vmatpush.bf16.msra.mxu2 %v857_v24 }
  0xb8   : > { %v346_v25 = vpop.xlane.xlu0 %345 }
  0xb9   : > { %v351_v27 = vmul.f32 %v350_v26, %v346_v25  ;;  %v358_v44 = vmul.f32 %v357_v43, %v346_v25 }
  0xbb   : > { %v353_v29 = vadd.f32 %v445_v28, %v351_v27  ;;  %v360_v46 = vadd.f32 %v359_v45, %v358_v44 }
  0xbd   : > { %965 = vrcp.f32 %v353_v29 }
  0xbe   : > { %967 = vrcp.f32 %v360_v46 }
  0xc3   : > { %v966_v33 = vpop.eup %965 }
  0xc4   : > { %v968_v51 = vpop.eup %967 }
  0xde   : > { %v441_v16 = vpop.f32.mrf.mxu0 }
  0xdf   : > { %v447_v17 = vpack.c.bf16 %v441_v16, %v441_v16  ;;  %v446_v31 = vmul.f32 %v445_v28, %v441_v16 }
  0xe1   : > { %v453_v18 = vsel %vm451_vm1, %v447_v17, 0 }
  0xe2   : > { %462 = vmatpush.bf16.msra.mxu1 %v453_v18 }
  0xe5   : > { %808 = vmatmul.msk.bf16.vlgmr.msra.gmra.mxu1 %vm343_vm0, %v347_v19 }
  0xe6   : > { %v443_v20 = vpop.f32.mrf.mxu0 }
 0x162   : > { %v464_v30 = vpop.f32.mrf.mxu1 }
 0x163   : > { %v469_v32 = vmul.f32 %v464_v30, %v350_v26 }
 0x165   : > { %v470_v34 = vadd.f32 %v469_v32, %v446_v31 }
 0x167   : > { %v471_v35 = vmul.f32 %v966_v33, %v470_v34 }
 0x169   : > { %v472_v36 = vmax.f32 %v471_v35, 0.0 }
 0x16a   : > { %v466_v37 = vpop.f32.mrf.mxu1 }
 0x16b   : > { %v477_v38 = vpack.c.bf16 %v472_v36, %v472_v36 }
 0x16d   : > { %551 = vmatmul.bf16.vlgmr.msra.gmra.mxu2 %v477_v38 }
 0x1f0   : > { %v552_v39 = vpop.f32.mrf.mxu2 }
 0x1f1   : > { %v558_v40 = vpack.c.bf16 %v552_v39, %v552_v39  ;;  %v557_v48 = vmul.f32 %v552_v39, %v359_v45 }
 0x1f3   : > { %v560_v41 = vsel %vm451_vm1, %v558_v40, 0 }
 0x1f4   : > { %569 = vmatpush.bf16.msra.mxu3 %v560_v41 }
 0x1f7   : > { %843 = vmatmul.msk.bf16.vlgmr.msra.gmra.mxu3 %vm343_vm0, %v347_v19 }
 0x1f8   : > { %v554_v42 = vpop.f32.mrf.mxu2 }
 0x27a   : > { %v571_v47 = vpop.f32.mrf.mxu3 }
 0x27b   : > { %v576_v49 = vmul.f32 %v571_v47, %v357_v43 }
 0x27d   : > { %v577_v50 = vadd.f32 %v576_v49, %v557_v48 }
 0x27f   : > { %v578_v52 = vmul.f32 %v968_v51, %v577_v50 }
 0x281   : > { %v579_v53 = vmax.f32 %v578_v52, 0.0 }
 0x282   : > { %v573_v54 = vpop.f32.mrf.mxu3 }
 0x283   : > { %v844_v55 = vmul.f32 -1.442695, %v579_v53 }
 0x285   : > { %969 = vpow2.f32 %v844_v55 }
 0x28b   : > { %v970_v56 = vpop.eup %969 }
 0x28c   : > { %v587_v57 = vadd.f32 1.0, %v970_v56 }
 0x28e   : > { %971 = vrcp.f32 %v587_v57  ;;  %v599_v61 = vand.u32 2147483648, %v587_v57  ;;  %v597_v63 = vand.u32 2147483647, %v587_v57  ;;  %vm593_vm3 = vweird.f32 %v587_v57 }
 0x290   : > { %v600_v2 = vor.u32 1.1754944e-38, %v599_v61  ;;  %vm598_vm5 = vcmp.eq.f32.partialorder %v597_v63, 8.507059e+37 }
 0x294   : > { %v972_v58 = vpop.eup %971 }
 0x295   : > { %v589_v59 = vmul.f32 %v972_v58, %v587_v57  ;;  %vm594_vm2 = vweird.f32 %v972_v58 }
 0x296   : > { %vm595_vm4 = vmor %vm593_vm3, %vm594_vm2 }
 0x297   : > { %v590_v60 = vsub.f32 1.0, %v589_v59 }
 0x299   : > { %v591_v62 = vmul.f32 %v972_v58, %v590_v60 }
 0x29b   : > { %v592_v1 = vadd.f32 %v972_v58, %v591_v62 }
 0x29d   : > { %v596_v3 = vsel %vm595_vm4, %v972_v58, %v592_v1 }
 0x29e   : > { %v601_v4 = vsel %vm598_vm5, %v600_v2, %v596_v3 }
 0x29f   : > { %v603_v5 = vadd.f32 %v601_v4, %v582_v0 }
 0x2a1   : > { %604 = vst [vmem:[%s340_s14] sm:$0xff] %v603_v5 }
 0x2a2   : > { %1120 = shalt.err (!%p1117_p13)
}
 0x2a3   : > { %881 = dma.vmem_to_hbm [thread:$0]  (%p1305_p4), %s620_s15, 128, %s622_s21, %s606_s16  }
 0x2a4 PF: > { %s633_s0 = sand.u32 1, %s1171_s18   ;;  %p901_p0 = pnand %p762_p5, %p1313_p7 }
 0x2a5   : > { %s634_s17 = scalar_lea.sflag [#allocation5], %s633_s0 }
 0x2a6   : > { %p902_p2 = pneg %p901_p0 }
 0x2a8   : > { %1166 = dma.done.wait (%p902_p2), %s634_s17, 128  }
 0x2a9   : > { %1168 = vsyncadd (%p902_p2), %s634_s17, 4294967168  ;;  %s26_s23 = sadd.s32 1, %s1191_s23   ;;  %s1431_s25 = sld [smem:[#allocation22_spill]] }
 0x2aa   : > { %p23_p6 = scmp.ge.s32.totalorder %s26_s23, 4   ;;  %s1432_s21 = sld [smem:[#allocation20_spill]] }
 0x2ab   : > { %s1433_s22 = sld [smem:[#allocation21_spill]]  ;;  %s1434_s18 = smov %s1175_s19 }
 0x2ac   : > { %s1435_s19 = smov %s1179_s20  ;;  %25 = sbr.rel (!%p23_p6) target bundleno = 14 (0xe), region = 112 }
 0x2af   : > { %s1436_s20 = smov %s1431_s25 }
 0x2b1   :  { %640 = vsyncpa [#allocation4], 1 }
 0x2b2   :  { %642 = vsyncpa [#allocation4 + $0x1], 1 }
 0x2b3   :  { %643 = vsyncpa [#allocation11], 1 }
 0x2b4   :  { %645 = vsyncpa [#allocation11 + $0x1], 1 }
 0x2b5   :  { %646 = vsyncpa [#allocation5], 1 }
 0x2b6   :  { %648 = vsyncpa [#allocation5 + $0x1], 1 }
 0x2b7   :  { %649 = vsyncpa [#allocation6], 1 }
 0x2b8   :  { %651 = vsyncpa [#allocation6 + $0x1], 1 }
 0x2b9   :  { %652 = vsyncpa [#allocation8], 1 }

</bundles_post_ra>
